<compile_context>
chip_gen: v7x
topology: tpu7x:2x2x1
jax: 0.10.0
libtpu: 0.0.40
codegen_flags: <defaults>
</compile_context>

<pallas_src>
import functools
import math

import jax
import jax.numpy as jnp
from jax.experimental import pallas as pl
from jax.experimental.pallas import tpu as pltpu


def _self_attention_kernel(x_ref, w_ref, b_ref, out_ref, rel_ref, *,
                           emb_dim, mxu_dtype):
    block_b, S, D = x_ref.shape
    H = w_ref.shape[1] // 3

    x = x_ref[...]                                        # (block_b, S, D), native dtype
    x2d = x.reshape(block_b * S, D)

    # Fused phi/theta/g projection: one (block_b*S, D) @ (D, 3H) MXU pass,
    # operands in the caller's dtype, f32 accumulation.
    w = w_ref[...].astype(x2d.dtype)
    proj = jnp.dot(x2d, w, preferred_element_type=jnp.float32)
    proj = proj + b_ref[...].astype(jnp.float32)          # (block_b*S, 3H)

    phi = proj[:, 0 * H:1 * H].reshape(block_b, S, H)
    theta = proj[:, 1 * H:2 * H].reshape(block_b, S, H)
    g = proj[:, 2 * H:3 * H].reshape(block_b, S, H)

    # rel[b] = phi[b] @ theta[b]^T -- bf16 MXU feeds, f32 accumulation,
    # NT contraction (no explicit transpose of theta).
    rel = jnp.einsum("bsh,bth->bst",
                     phi.astype(mxu_dtype), theta.astype(mxu_dtype),
                     preferred_element_type=jnp.float32)   # (block_b, S, S)
    rel = rel * (1.0 / math.sqrt(float(emb_dim)))
    rel = jnp.maximum(rel, 0.0)                            # ReLU
    # Symmetrize.  (If the XLU slot ever saturates, recompute the transpose
    # term as relu(theta @ phi^T) on the MXU instead -- see review note.)
    rel = (rel + jnp.swapaxes(rel, -1, -2)) * 0.5
    row_sum = jnp.sum(rel, axis=-1, keepdims=True)
    # Exact normalization: rel is emitted to the caller, so approx reciprocal
    # is not acceptable here (correctness fix).
    rel = rel * (1.0 / (row_sum + 1e-8))

    # Attention output + residual (bf16 MXU feeds, f32 accumulation).
    a_att = jnp.einsum("bst,bth->bsh",
                       rel.astype(mxu_dtype), g.astype(mxu_dtype),
                       preferred_element_type=jnp.float32)  # (block_b, S, H)
    out_ref[...] = (a_att + x.astype(jnp.float32)).astype(out_ref.dtype)

    # Direct (block_b, S, S) write -- no packing temp, no wrapper unpack.
    rel_ref[...] = rel.astype(rel_ref.dtype)


def _vmem_capacity_bytes():
    """Per-TensorCore VMEM capacity (64 MiB on v7x, 128 MiB on v5e/v6e)."""
    try:
        info = pltpu.get_tpu_info()
        cap = getattr(info, "vmem_capacity_bytes", None)
        if isinstance(cap, int) and cap > 0:
            return cap
    except Exception:
        pass
    return 128 * 1024 * 1024   # v5e/v6e-sized fallback


def _tensorcores_per_chip():
    """Best-effort TC count (2 on v7x); falls back to 1 if undetectable."""
    try:
        info = pltpu.get_tpu_info()
        for attr in ("num_cores", "num_tensorcores", "tensorcores_per_chip"):
            v = getattr(info, attr, None)
            if isinstance(v, int) and v > 0:
                return v
    except Exception:
        pass
    return 1


def _choose_block_b(batch, seg, dim, hid, in_itemsize, mxu_itemsize,
                    vmem_budget_bytes, min_grid=1):
    """Largest divisor of `batch` fitting the VMEM budget, keeping the grid
    length >= min_grid (one step per TensorCore)."""
    best = 1
    for cand in range(1, batch + 1):
        if batch % cand:
            continue
        if min_grid > 1 and batch >= min_grid and batch // cand < min_grid:
            continue
        rows = cand * seg
        io = (2 * rows * dim * in_itemsize        # x block (double-buffered)
              + 2 * rows * dim * in_itemsize      # out block
              + 2 * cand * seg * seg * 4)         # rel block (f32)
        wb = (dim * 3 * hid + 3 * hid) * 4        # weights+bias, single-buffered
        tmp = (rows * 3 * hid * 4                 # fused projection (f32)
               + 3 * rows * hid * 4               # phi/theta/g slices
               + 2 * rows * hid * mxu_itemsize    # bf16 copies of phi/theta
               + 2 * cand * seg * seg * 4         # rel + swapaxes temp (f32)
               + cand * seg * seg * mxu_itemsize  # bf16 rel for 2nd matmul
               + rows * hid * (4 + mxu_itemsize)) # a_att f32 + bf16 g
        mosaic_scratch = 2 * 1024 * 1024          # internal-scratch headroom
        if io + wb + tmp + mosaic_scratch <= vmem_budget_bytes:
            best = cand
    return best


def self_attention_pallas(x, w_phi, w_theta, w_g, b_phi, b_theta, b_g, *,
                          block_b=None, mxu_dtype=jnp.bfloat16,
                          interpret=False):
    """x: (B, S, D); weights (D, H); biases (1, H). Requires H == D."""
    B, S, D = x.shape
    H = w_phi.shape[1]
    assert H == D, "hidden_dim must equal audio_emb_dim for the residual add"

    # Fuse the three projections into one (D, 3H) weight / (1, 3H) bias.
    w_all = jnp.concatenate([w_phi, w_theta, w_g], axis=1)
    b_all = jnp.concatenate([b_phi, b_theta, b_g], axis=1)

    in_itemsize = jnp.dtype(x.dtype).itemsize
    mxu_itemsize = jnp.dtype(mxu_dtype).itemsize

    # Generation-aware budgets: ~40% of VMEM for the block picker, vmem_limit
    # at ~75% (capped at 100 MiB).  v7x (64 MiB): 25.6 / 48 MiB.
    # v5e/v6e (128 MiB): 51 / 96 MiB.
    vmem_cap = _vmem_capacity_bytes()
    vmem_limit = int(min(100 * 1024 * 1024, vmem_cap * 3 // 4))
    picker_budget = int(vmem_cap * 2 // 5)
    min_grid = _tensorcores_per_chip()

    if block_b is None:
        block_b = _choose_block_b(B, S, D, H, in_itemsize, mxu_itemsize,
                                  picker_budget, min_grid=min_grid)
    if B % block_b != 0:
        raise ValueError(f"block_b={block_b} must divide batch={B}")
    G = B // block_b

    kernel = functools.partial(_self_attention_kernel, emb_dim=D,
                               mxu_dtype=mxu_dtype)

    out_shapes = (
        jax.ShapeDtypeStruct((B, S, D), x.dtype),       # a_att_plus_ori
        jax.ShapeDtypeStruct((B, S, S), jnp.float32),   # a_seg_rel
    )

    flops = 2 * B * S * H * (3 * D + 2 * S)
    bytes_accessed = (x.size * in_itemsize
                      + w_all.size * jnp.dtype(w_all.dtype).itemsize
                      + b_all.size * jnp.dtype(b_all.dtype).itemsize
                      + B * S * D * in_itemsize
                      + B * S * S * 4)

    def build(single_buffer_params):
        # Grid-invariant weights/bias: single-buffer them if the platform
        # supports pipeline_mode (frees (D*3H+3H)*itemsize of VMEM).
        extra = {"pipeline_mode": pl.Buffered(1)} if single_buffer_params else {}
        return pl.pallas_call(
            kernel,
            out_shape=out_shapes,
            grid_spec=pltpu.PrefetchScalarGridSpec(
                num_scalar_prefetch=0,
                grid=(G,),
                in_specs=[
                    pl.BlockSpec((block_b, S, D), lambda g: (g, 0, 0)),   # x
                    pl.BlockSpec((D, 3 * H), lambda g: (0, 0), **extra),  # weights
                    pl.BlockSpec((1, 3 * H), lambda g: (0, 0), **extra),  # biases
                ],
                out_specs=[
                    pl.BlockSpec((block_b, S, D), lambda g: (g, 0, 0)),
                    pl.BlockSpec((block_b, S, S), lambda g: (g, 0, 0)),
                ],
            ),
            compiler_params=pltpu.CompilerParams(
                dimension_semantics=("parallel",),
                vmem_limit_bytes=vmem_limit,
            ),
            cost_estimate=pl.CostEstimate(
                flops=flops, transcendentals=0, bytes_accessed=bytes_accessed),
            interpret=interpret,
        )

    try:
        out, rel = build(True)(x, w_all, b_all)
        jax.block_until_ready((out, rel))
    except Exception:
        # Fallback if single-buffered pipeline_mode is rejected on this
        # platform / jax version.
        out, rel = build(False)(x, w_all, b_all)
    return out, rel


def _xavier_uniform(key, fan_in, fan_out, dtype=jnp.float32):
    limit = math.sqrt(6.0 / (fan_in + fan_out))
    return jax.random.uniform(key, (fan_in, fan_out), dtype=dtype,
                              minval=-limit, maxval=limit)


def _reference(x, w_phi, w_theta, w_g, b_phi, b_theta, b_g):
    D = x.shape[-1]
    phi_a = x @ w_phi + b_phi
    theta_a = x @ w_theta + b_theta
    g_a = x @ w_g + b_g
    rel = jnp.einsum("bsh,bth->bst", phi_a, theta_a) / jnp.sqrt(jnp.float32(D))
    rel = jax.nn.relu(rel)
    rel = (rel + jnp.swapaxes(rel, 1, 2)) / 2
    rel = rel / (jnp.sum(rel, axis=-1, keepdims=True) + 1e-8)
    a_att = jnp.einsum("bst,bth->bsh", rel, g_a)
    return a_att + x, rel


if __name__ == "__main__":
    key = jax.random.PRNGKey(0)
    k_x, k_p, k_t, k_g = jax.random.split(key, 4)

    B, S, D = 4, 8, 32          # batch, seg_num, audio_emb_dim
    H = D                       # hidden_dim == audio_emb_dim (see note above)

    x = jax.random.normal(k_x, (B, S, D), dtype=jnp.float32)

    # Deterministic xavier-uniform weights, zero biases (as in init_layers).
    w_phi = _xavier_uniform(k_p, D, H)
    w_theta = _xavier_uniform(k_t, D, H)
    w_g = _xavier_uniform(k_g, D, H)
    b_phi = jnp.zeros((1, H), jnp.float32)
    b_theta = jnp.zeros((1, H), jnp.float32)
    b_g = jnp.zeros((1, H), jnp.float32)

    # block_b=2 -> grid=(2,), exercising the batched-block index maps.
    out, rel = self_attention_pallas(x, w_phi, w_theta, w_g,
                                     b_phi, b_theta, b_g, block_b=2)
    jax.block_until_ready((out, rel))

    ref_out, ref_rel = _reference(x, w_phi, w_theta, w_g, b_phi, b_theta, b_g)
    # Tolerance sized for bf16 MXU feeds (f32 accumulation): expected error
    # ~5e-3-1e-2 on O(1) values; row normalization itself is exact.
    assert jnp.allclose(out, ref_out, atol=3e-2, rtol=3e-2), \
        f"out max err {jnp.max(jnp.abs(out - ref_out))}"
    assert jnp.allclose(rel, ref_rel, atol=3e-2, rtol=3e-2), \
        f"rel max err {jnp.max(jnp.abs(rel - ref_rel))}"

    print("KERNEL_OK")
</pallas_src>

<mosaic_0001>
module attributes {stable_mosaic.version = 11 : i64} {
  func.func @_self_attention_kernel(%arg0: i32, %arg1: memref<2x8x32xf32, #tpu.memory_space<vmem>>, %arg2: memref<32x96xf32, #tpu.memory_space<vmem>>, %arg3: memref<1x96xf32, #tpu.memory_space<vmem>>, %arg4: memref<2x8x32xf32, #tpu.memory_space<vmem>>, %arg5: memref<2x8x8xf32, #tpu.memory_space<vmem>>) attributes {dimension_semantics = [#tpu.dimension_semantics<parallel>], iteration_bounds = array<i64: 2>, scalar_prefetch = 0 : i64, scratch_operands = 0 : i64, tpu.core_type = #tpu.core_type<tc>, window_params = [{transform_indices = @transform_0, window_bounds = array<i64: 2, 8, 32>}, {pipeline_mode = #tpu.pipeline_mode<synchronous>, transform_indices = @transform_1, window_bounds = array<i64: 32, 96>}, {pipeline_mode = #tpu.pipeline_mode<synchronous>, transform_indices = @transform_2, window_bounds = array<i64: 1, 96>}, {transform_indices = @transform_3, window_bounds = array<i64: 2, 8, 32>}, {transform_indices = @transform_4, window_bounds = array<i64: 2, 8, 8>}]} {
    %c0 = arith.constant 0 : index
    %c0_0 = arith.constant 0 : index
    %c0_1 = arith.constant 0 : index
    %0 = vector.load %arg1[%c0, %c0_0, %c0_1] : memref<2x8x32xf32, #tpu.memory_space<vmem>>, vector<2x8x32xf32>
    %1 = vector.shape_cast %0 : vector<2x8x32xf32> to vector<16x32xf32>
    %c0_2 = arith.constant 0 : index
    %c0_3 = arith.constant 0 : index
    %2 = vector.load %arg2[%c0_2, %c0_3] : memref<32x96xf32, #tpu.memory_space<vmem>>, vector<32x96xf32>
    %cst = arith.constant dense<0.000000e+00> : vector<16x96xf32>
    %3 = tpu.matmul %1, %2, %cst {dimension_numbers = #tpu.dot_dimension_numbers<[1], [0], [0], [1], [0, 0, 1, 1], [], []>} : vector<16x32xf32>, vector<32x96xf32>, vector<16x96xf32> -> vector<16x96xf32>
    %c0_4 = arith.constant 0 : index
    %c0_5 = arith.constant 0 : index
    %4 = vector.load %arg3[%c0_4, %c0_5] : memref<1x96xf32, #tpu.memory_space<vmem>>, vector<1x96xf32>
    %5 = vector.broadcast %4 : vector<1x96xf32> to vector<16x96xf32>
    %6 = arith.addf %3, %5 : vector<16x96xf32>
    %7 = vector.extract_strided_slice %6 {offsets = [0, 0], sizes = [16, 32], strides = [1, 1]} : vector<16x96xf32> to vector<16x32xf32>
    %8 = vector.shape_cast %7 : vector<16x32xf32> to vector<2x8x32xf32>
    %9 = vector.extract_strided_slice %6 {offsets = [0, 32], sizes = [16, 32], strides = [1, 1]} : vector<16x96xf32> to vector<16x32xf32>
    %10 = vector.shape_cast %9 : vector<16x32xf32> to vector<2x8x32xf32>
    %11 = vector.extract_strided_slice %6 {offsets = [0, 64], sizes = [16, 32], strides = [1, 1]} : vector<16x96xf32> to vector<16x32xf32>
    %12 = vector.shape_cast %11 : vector<16x32xf32> to vector<2x8x32xf32>
    %13 = arith.truncf %8 : vector<2x8x32xf32> to vector<2x8x32xbf16>
    %14 = arith.truncf %10 : vector<2x8x32xf32> to vector<2x8x32xbf16>
    "tpu.trace_start"() <{level = 10 : i32, message = "bsh,bth->bst"}> : () -> ()
    %cst_6 = arith.constant dense<0.000000e+00> : vector<2x8x8xf32>
    %15 = tpu.matmul %13, %14, %cst_6 {dimension_numbers = #tpu.dot_dimension_numbers<[2], [2], [1], [1], [0, 0, 0, 1, 1, 1], [0], [0]>} : vector<2x8x32xbf16>, vector<2x8x32xbf16>, vector<2x8x8xf32> -> vector<2x8x8xf32>
    "tpu.trace_stop"() : () -> ()
    %cst_7 = arith.constant 0.176776692 : f32
    %16 = vector.broadcast %cst_7 : f32 to vector<2x8x8xf32>
    %17 = arith.mulf %15, %16 : vector<2x8x8xf32>
    %cst_8 = arith.constant 0.000000e+00 : f32
    %18 = vector.broadcast %cst_8 : f32 to vector<2x8x8xf32>
    %19 = arith.maximumf %17, %18 : vector<2x8x8xf32>
    %20 = tpu.transpose %19, [0, 2, 1] : vector<2x8x8xf32> -> vector<2x8x8xf32>
    %21 = arith.addf %19, %20 : vector<2x8x8xf32>
    %cst_9 = arith.constant 5.000000e-01 : f32
    %22 = vector.broadcast %cst_9 : f32 to vector<2x8x8xf32>
    %23 = arith.mulf %21, %22 : vector<2x8x8xf32>
    %cst_10 = arith.constant dense<0.000000e+00> : vector<2x8xf32>
    %24 = vector.multi_reduction <add>, %23, %cst_10 [2] : vector<2x8x8xf32> to vector<2x8xf32>
    %25 = vector.shape_cast %24 : vector<2x8xf32> to vector<2x8x1xf32>
    %cst_11 = arith.constant 9.99999993E-9 : f32
    %26 = vector.broadcast %cst_11 : f32 to vector<2x8x1xf32>
    %27 = arith.addf %25, %26 : vector<2x8x1xf32>
    %cst_12 = arith.constant 1.000000e+00 : f32
    %28 = vector.broadcast %cst_12 : f32 to vector<2x8x1xf32>
    %29 = arith.divf %28, %27 : vector<2x8x1xf32>
    %30 = vector.broadcast %29 : vector<2x8x1xf32> to vector<2x8x8xf32>
    %31 = arith.mulf %23, %30 : vector<2x8x8xf32>
    %32 = arith.truncf %31 : vector<2x8x8xf32> to vector<2x8x8xbf16>
    %33 = arith.truncf %12 : vector<2x8x32xf32> to vector<2x8x32xbf16>
    "tpu.trace_start"() <{level = 10 : i32, message = "bst,bth->bsh"}> : () -> ()
    %cst_13 = arith.constant dense<0.000000e+00> : vector<2x8x32xf32>
    %34 = tpu.matmul %32, %33, %cst_13 {dimension_numbers = #tpu.dot_dimension_numbers<[2], [1], [1], [2], [0, 0, 0, 1, 1, 2], [0], [0]>} : vector<2x8x8xbf16>, vector<2x8x32xbf16>, vector<2x8x32xf32> -> vector<2x8x32xf32>
    "tpu.trace_stop"() : () -> ()
    %35 = arith.addf %34, %0 : vector<2x8x32xf32>
    %c0_14 = arith.constant 0 : index
    %c0_15 = arith.constant 0 : index
    %c0_16 = arith.constant 0 : index
    %36 = vector.load %arg4[%c0_14, %c0_15, %c0_16] : memref<2x8x32xf32, #tpu.memory_space<vmem>>, vector<2x8x32xf32>
    tpu.vector_store %arg4[%c0_14, %c0_15, %c0_16], %35 {strides = array<i32>} : memref<2x8x32xf32, #tpu.memory_space<vmem>>, vector<2x8x32xf32>,
    %c0_17 = arith.constant 0 : index
    %c0_18 = arith.constant 0 : index
    %c0_19 = arith.constant 0 : index
    %37 = vector.load %arg5[%c0_17, %c0_18, %c0_19] : memref<2x8x8xf32, #tpu.memory_space<vmem>>, vector<2x8x8xf32>
    tpu.vector_store %arg5[%c0_17, %c0_18, %c0_19], %31 {strides = array<i32>} : memref<2x8x8xf32, #tpu.memory_space<vmem>>, vector<2x8x8xf32>,
    return
  }
  func.func @transform_0(%arg0: i32) -> (i32, i32, i32) {
    %c0_i32 = arith.constant 0 : i32
    %c0_i32_0 = arith.constant 0 : i32
    %c0_i32_1 = arith.constant 0 : i32
    return %arg0, %c0_i32, %c0_i32_0 : i32, i32, i32
  }
  func.func @transform_1(%arg0: i32) -> (i32, i32) {
    %c0_i32 = arith.constant 0 : i32
    %c0_i32_0 = arith.constant 0 : i32
    %c0_i32_1 = arith.constant 0 : i32
    return %c0_i32, %c0_i32_0 : i32, i32
  }
  func.func @transform_2(%arg0: i32) -> (i32, i32) {
    %c0_i32 = arith.constant 0 : i32
    %c0_i32_0 = arith.constant 0 : i32
    %c0_i32_1 = arith.constant 0 : i32
    return %c0_i32, %c0_i32_0 : i32, i32
  }
  func.func @transform_3(%arg0: i32) -> (i32, i32, i32) {
    %c0_i32 = arith.constant 0 : i32
    %c0_i32_0 = arith.constant 0 : i32
    %c0_i32_1 = arith.constant 0 : i32
    return %arg0, %c0_i32, %c0_i32_0 : i32, i32, i32
  }
  func.func @transform_4(%arg0: i32) -> (i32, i32, i32) {
    %c0_i32 = arith.constant 0 : i32
    %c0_i32_0 = arith.constant 0 : i32
    %c0_i32_1 = arith.constant 0 : i32
    return %arg0, %c0_i32, %c0_i32_0 : i32, i32, i32
  }
}

module attributes {stable_mosaic.version = 11 : i64} {
  func.func @_self_attention_kernel(%arg0: i32, %arg1: memref<2x8x32xf32, #tpu.memory_space<vmem>>, %arg2: memref<32x96xf32, #tpu.memory_space<vmem>>, %arg3: memref<1x96xf32, #tpu.memory_space<vmem>>, %arg4: memref<2x8x32xf32, #tpu.memory_space<vmem>>, %arg5: memref<2x8x8xf32, #tpu.memory_space<vmem>>) attributes {dimension_semantics = [#tpu.dimension_semantics<parallel>], iteration_bounds = array<i64: 2>, scalar_prefetch = 0 : i64, scratch_operands = 0 : i64, tpu.core_type = #tpu.core_type<tc>, window_params = [{transform_indices = @transform_0, window_bounds = array<i64: 2, 8, 32>}, {pipeline_mode = #tpu.pipeline_mode<synchronous>, transform_indices = @transform_1, window_bounds = array<i64: 32, 96>}, {pipeline_mode = #tpu.pipeline_mode<synchronous>, transform_indices = @transform_2, window_bounds = array<i64: 1, 96>}, {transform_indices = @transform_3, window_bounds = array<i64: 2, 8, 32>}, {transform_indices = @transform_4, window_bounds = array<i64: 2, 8, 8>}]} {
    %c0 = arith.constant 0 : index
    %c0_0 = arith.constant 0 : index
    %c0_1 = arith.constant 0 : index
    %0 = vector.load %arg1[%c0, %c0_0, %c0_1] : memref<2x8x32xf32, #tpu.memory_space<vmem>>, vector<2x8x32xf32>
    %1 = vector.shape_cast %0 : vector<2x8x32xf32> to vector<16x32xf32>
    %c0_2 = arith.constant 0 : index
    %c0_3 = arith.constant 0 : index
    %2 = vector.load %arg2[%c0_2, %c0_3] : memref<32x96xf32, #tpu.memory_space<vmem>>, vector<32x96xf32>
    %cst = arith.constant dense<0.000000e+00> : vector<16x96xf32>
    %3 = tpu.matmul %1, %2, %cst {dimension_numbers = #tpu.dot_dimension_numbers<[1], [0], [0], [1], [0, 0, 1, 1], [], []>} : vector<16x32xf32>, vector<32x96xf32>, vector<16x96xf32> -> vector<16x96xf32>
    %c0_4 = arith.constant 0 : index
    %c0_5 = arith.constant 0 : index
    %4 = vector.load %arg3[%c0_4, %c0_5] : memref<1x96xf32, #tpu.memory_space<vmem>>, vector<1x96xf32>
    %5 = vector.broadcast %4 : vector<1x96xf32> to vector<16x96xf32>
    %6 = arith.addf %3, %5 : vector<16x96xf32>
    %7 = vector.extract_strided_slice %6 {offsets = [0, 0], sizes = [16, 32], strides = [1, 1]} : vector<16x96xf32> to vector<16x32xf32>
    %8 = vector.shape_cast %7 : vector<16x32xf32> to vector<2x8x32xf32>
    %9 = vector.extract_strided_slice %6 {offsets = [0, 32], sizes = [16, 32], strides = [1, 1]} : vector<16x96xf32> to vector<16x32xf32>
    %10 = vector.shape_cast %9 : vector<16x32xf32> to vector<2x8x32xf32>
    %11 = vector.extract_strided_slice %6 {offsets = [0, 64], sizes = [16, 32], strides = [1, 1]} : vector<16x96xf32> to vector<16x32xf32>
    %12 = vector.shape_cast %11 : vector<16x32xf32> to vector<2x8x32xf32>
    %13 = arith.truncf %8 : vector<2x8x32xf32> to vector<2x8x32xbf16>
    %14 = arith.truncf %10 : vector<2x8x32xf32> to vector<2x8x32xbf16>
    "tpu.trace_start"() <{level = 10 : i32, message = "bsh,bth->bst"}> : () -> ()
    %cst_6 = arith.constant dense<0.000000e+00> : vector<2x8x8xf32>
    %15 = tpu.matmul %13, %14, %cst_6 {dimension_numbers = #tpu.dot_dimension_numbers<[2], [2], [1], [1], [0, 0, 0, 1, 1, 1], [0], [0]>} : vector<2x8x32xbf16>, vector<2x8x32xbf16>, vector<2x8x8xf32> -> vector<2x8x8xf32>
    "tpu.trace_stop"() : () -> ()
    %cst_7 = arith.constant 0.176776692 : f32
    %16 = vector.broadcast %cst_7 : f32 to vector<2x8x8xf32>
    %17 = arith.mulf %15, %16 : vector<2x8x8xf32>
    %cst_8 = arith.constant 0.000000e+00 : f32
    %18 = vector.broadcast %cst_8 : f32 to vector<2x8x8xf32>
    %19 = arith.maximumf %17, %18 : vector<2x8x8xf32>
    %20 = tpu.transpose %19, [0, 2, 1] : vector<2x8x8xf32> -> vector<2x8x8xf32>
    %21 = arith.addf %19, %20 : vector<2x8x8xf32>
    %cst_9 = arith.constant 5.000000e-01 : f32
    %22 = vector.broadcast %cst_9 : f32 to vector<2x8x8xf32>
    %23 = arith.mulf %21, %22 : vector<2x8x8xf32>
    %cst_10 = arith.constant dense<0.000000e+00> : vector<2x8xf32>
    %24 = vector.multi_reduction <add>, %23, %cst_10 [2] : vector<2x8x8xf32> to vector<2x8xf32>
    %25 = vector.shape_cast %24 : vector<2x8xf32> to vector<2x8x1xf32>
    %cst_11 = arith.constant 9.99999993E-9 : f32
    %26 = vector.broadcast %cst_11 : f32 to vector<2x8x1xf32>
    %27 = arith.addf %25, %26 : vector<2x8x1xf32>
    %cst_12 = arith.constant 1.000000e+00 : f32
    %28 = vector.broadcast %cst_12 : f32 to vector<2x8x1xf32>
    %29 = arith.divf %28, %27 : vector<2x8x1xf32>
    %30 = vector.broadcast %29 : vector<2x8x1xf32> to vector<2x8x8xf32>
    %31 = arith.mulf %23, %30 : vector<2x8x8xf32>
    %32 = arith.truncf %31 : vector<2x8x8xf32> to vector<2x8x8xbf16>
    %33 = arith.truncf %12 : vector<2x8x32xf32> to vector<2x8x32xbf16>
    "tpu.trace_start"() <{level = 10 : i32, message = "bst,bth->bsh"}> : () -> ()
    %cst_13 = arith.constant dense<0.000000e+00> : vector<2x8x32xf32>
    %34 = tpu.matmul %32, %33, %cst_13 {dimension_numbers = #tpu.dot_dimension_numbers<[2], [1], [1], [2], [0, 0, 0, 1, 1, 2], [0], [0]>} : vector<2x8x8xbf16>, vector<2x8x32xbf16>, vector<2x8x32xf32> -> vector<2x8x32xf32>
    "tpu.trace_stop"() : () -> ()
    %35 = arith.addf %34, %0 : vector<2x8x32xf32>
    %c0_14 = arith.constant 0 : index
    %c0_15 = arith.constant 0 : index
    %c0_16 = arith.constant 0 : index
    %36 = vector.load %arg4[%c0_14, %c0_15, %c0_16] : memref<2x8x32xf32, #tpu.memory_space<vmem>>, vector<2x8x32xf32>
    tpu.vector_store %arg4[%c0_14, %c0_15, %c0_16], %35 {strides = array<i32>} : memref<2x8x32xf32, #tpu.memory_space<vmem>>, vector<2x8x32xf32>,
    %c0_17 = arith.constant 0 : index
    %c0_18 = arith.constant 0 : index
    %c0_19 = arith.constant 0 : index
    %37 = vector.load %arg5[%c0_17, %c0_18, %c0_19] : memref<2x8x8xf32, #tpu.memory_space<vmem>>, vector<2x8x8xf32>
    tpu.vector_store %arg5[%c0_17, %c0_18, %c0_19], %31 {strides = array<i32>} : memref<2x8x8xf32, #tpu.memory_space<vmem>>, vector<2x8x8xf32>,
    return
  }
  func.func @transform_0(%arg0: i32) -> (i32, i32, i32) {
    %c0_i32 = arith.constant 0 : i32
    %c0_i32_0 = arith.constant 0 : i32
    %c0_i32_1 = arith.constant 0 : i32
    return %arg0, %c0_i32, %c0_i32_0 : i32, i32, i32
  }
  func.func @transform_1(%arg0: i32) -> (i32, i32) {
    %c0_i32 = arith.constant 0 : i32
    %c0_i32_0 = arith.constant 0 : i32
    %c0_i32_1 = arith.constant 0 : i32
    return %c0_i32, %c0_i32_0 : i32, i32
  }
  func.func @transform_2(%arg0: i32) -> (i32, i32) {
    %c0_i32 = arith.constant 0 : i32
    %c0_i32_0 = arith.constant 0 : i32
    %c0_i32_1 = arith.constant 0 : i32
    return %c0_i32, %c0_i32_0 : i32, i32
  }
  func.func @transform_3(%arg0: i32) -> (i32, i32, i32) {
    %c0_i32 = arith.constant 0 : i32
    %c0_i32_0 = arith.constant 0 : i32
    %c0_i32_1 = arith.constant 0 : i32
    return %arg0, %c0_i32, %c0_i32_0 : i32, i32, i32
  }
  func.func @transform_4(%arg0: i32) -> (i32, i32, i32) {
    %c0_i32 = arith.constant 0 : i32
    %c0_i32_0 = arith.constant 0 : i32
    %c0_i32_1 = arith.constant 0 : i32
    return %arg0, %c0_i32, %c0_i32_0 : i32, i32, i32
  }
}

</mosaic_0001>

<bundles_post_ra>
// kernel: tpu_custom_call.1
= control target key start
LH: loop header
LB: loop body
LE: loop exit
PB: predicated region body
PF: predicated region fallthrough
CT: control target
= control target key end

     0   :  { %10 = vsyncpa [#allocation3], 0  ;;  %s1516_s0 = inlined_call_operand.hbm [shape: f32[4,8,32], index: 0, kind: input, shape index: {}]   ;;  %s1517_s1 = inlined_call_operand.hbm [shape: f32[32,96], index: 1, kind: input, shape index: {}]   ;;  %s1518_s2 = inlined_call_operand.hbm [shape: f32[1,96], index: 2, kind: input, shape index: {}]   ;;  %s1519_s3 = inlined_call_operand.hbm [shape: f32[4,8,32], index: 3, kind: output, shape index: {0}]   ;;  %s1520_s4 = inlined_call_operand.hbm [shape: f32[4,8,8], index: 4, kind: output, shape index: {1}]  }
   0x1   :  { %12 = vsyncpa [#allocation3 + $0x1], 0 }
   0x2   :  { %13 = vsyncpa [#allocation6], 0 }
   0x3   :  { %14 = vsyncpa [#allocation4], 0 }
   0x4   :  { %16 = vsyncpa [#allocation4 + $0x1], 0 }
   0x5   :  { %17 = vsyncpa [#allocation10], 0 }
   0x6   :  { %19 = vsyncpa [#allocation10 + $0x1], 0  ;;  %s1203_s15 = smov 0   ;;  %s1205_s16 = smov 0  }
   0x7   :  { %s1207_s17 = smov 0   ;;  %s1209_s18 = smov 0  }
   0x8 LB: > { %s1224_s19 = sadd.s32 4294967295, %s1163_s18   ;;  %s802_s20 = sadd.s32 4294967294, %s1163_s18   ;;  %s1163_s18 = sphi %s1209_s18, %s1540_s18   ;;  %s1159_s17 = sphi %s1207_s17, %s1539_s17   ;;  %s1155_s16 = sphi %s1205_s16, %s1538_s16   ;;  %s1151_s15 = sphi %s1203_s15, %s1537_s15  }
   0x9   : > { %p45_p0 = scmp.ne.s32.totalorder %s1155_s16, %s1151_s15  ;;  %p1521_p1 = scmp.eq.s32.totalorder %s1224_s19, 0 }
   0xa   : > { %p117_p3 = scmp.eq.s32.totalorder %s802_s20, 1  ;;  %p803_p5 = scmp.ge.s32.totalorder %s1163_s18, 1 }
   0xb   : > { %p1233_p4 = por %p1521_p1, %p45_p0  ;;  %p150_p7 = scmp.lt.s32.totalorder %s1163_s18, 3 }
   0xc   : > { %p1238_p6 = por %p117_p3, %p45_p0  ;;  %s1165_s24 = smov [#allocation5]  }
   0xd   : > { %s1524_s21 = scalar_select %p1233_p4, 1, 0 }
   0xe   : > { %s1525_s22 = scalar_select %p1238_p6, 1, 0 }
   0xf   : > { %p1243_p8 = pnand %p803_p5, %p150_p7  ;;  %s162_s25 = sshll.u32 %s1165_s24, 4  ;;  %s1247_s25 = int_to_ptr.vmem [resolvable:$true] %s162_s25 }
  0x10   : > { %s1166_s27 = smov [#allocation7]   ;;  %s975_s5 = scalar_lea.hbm %s1517_s1, 512 }
  0x11   : > { %p905_p9 = pneg %p1243_p8  ;;  %s176_s28 = sshll.u32 %s1166_s27, 4  ;;  %s1258_s28 = int_to_ptr.vmem [resolvable:$true] %s176_s28 }
  0x12   : > { %p976_p12 = scmp.ne.s32.totalorder %s1517_s1, %s975_s5  ;;  %p982_p5 = scmp.lt.u32.totalorder %s975_s5, %s1517_s1 }
  0x13   : > { %p1254_p11 = pnand %p905_p9, %p1521_p1 }
  0x15   : > { %p977_p13 = pneg %p1254_p11 }
  0x17   : > { %p978_p0 = pnand %p977_p13, %p976_p12 }
  0x19   : > { %p979_p3 = pneg %p978_p0 }
  0x1b   : > { %p984_p7 = pnand %p982_p5, %p979_p3 }
  0x1d   : > { %987 = shalt.err (!%p984_p7)
}
  0x1e   : > { %s988_s10 = scalar_lea.vmem %s1247_s25, 512  ;;  %p996_p2 = scmp.lt.s32.totalorder %s1247_s25, %s1247_s25 }
  0x1f   : > { %p989_p9 = scmp.ne.s32.totalorder %s1247_s25, %s988_s10  ;;  %p997_p12 = scmp.lt.s32.totalorder %s988_s10, %s988_s10 }
  0x21   : > { %p991_p10 = pnand %p989_p9, %p977_p13  ;;  %p998_p0 = por %p997_p12, %p996_p2 }
  0x23   : > { %p992_p1 = pneg %p991_p10 }
  0x25   : > { %p999_p6 = pnand %p998_p0, %p992_p1 }
  0x27   : > { %1002 = shalt.err (!%p999_p6)
}
  0x28   : > { %s1167_s11 = smov 128   ;;  %s1168_s12 = smov 8  }
  0x29   : > { %908 = dma.hbm_to_vmem [thread:$0]  (!%p1254_p11), %s1517_s1, 512, %s1247_s25, [#allocation6], %s1167_s11, %s1167_s11, %s1168_s12  }
  0x2a   : > { %s1003_s27 = scalar_lea.hbm %s1518_s2, 16 }
  0x2b   : > { %p1004_p1 = scmp.ne.s32.totalorder %s1518_s2, %s1003_s27  ;;  %p1010_p10 = scmp.lt.u32.totalorder %s1003_s27, %s1518_s2 }
  0x2d   : > { %p1006_p2 = pnand %p1004_p1, %p977_p13 }
  0x2f   : > { %p1007_p6 = pneg %p1006_p2 }
  0x31   : > { %p1012_p3 = pnand %p1010_p10, %p1007_p6 }
  0x33   : > { %1015 = shalt.err (!%p1012_p3)
}
  0x34   : > { %s1016_s25 = scalar_lea.vmem %s1258_s28, 16  ;;  %s1023_s7 = scalar_lea.vmem %s1258_s28, 32 }
  0x35   : > { %p1017_p5 = scmp.ne.s32.totalorder %s1258_s28, %s1016_s25  ;;  %p1024_p12 = scmp.lt.s32.totalorder %s1258_s28, %s1258_s28 }
  0x36   : > { %p1025_p0 = scmp.lt.s32.totalorder %s1023_s7, %s1016_s25 }
  0x37   : > { %p1019_p7 = pnand %p1017_p5, %p977_p13 }
  0x38   : > { %p1026_p1 = por %p1025_p0, %p1024_p12 }
  0x39   : > { %p1020_p9 = pneg %p1019_p7 }
  0x3b   : > { %p1027_p2 = pnand %p1026_p1, %p1020_p9 }
  0x3d   : > { %1030 = shalt.err (!%p1027_p2)
}
  0x3e   : > { %911 = dma.hbm_to_vmem [thread:$0]  (!%p1254_p11), %s1518_s2, 16, %s1258_s28, [#allocation6]  }
  0x3f   : > { %s1317_s10 = sadd.s32 1, %s1163_s18   ;;  %s32_s26 = sadd.s32 1, %s1159_s17 }
  0x40   : > { %s29_s13 = ssub.s32 %s1163_s18, %s1317_s10  ;;  %p39_p13 = scmp.ne.s32.totalorder %s1159_s17, %s1155_s16 }
  0x41   : > { %p30_p6 = scmp.eq.s32.totalorder %s29_s13, 0  ;;  %p40_p10 = scmp.eq.s32.totalorder %s1163_s18, 0 }
  0x42   : > { %p1528_p3 = scmp.eq.s32.totalorder %s1224_s19, 1  ;;  %p925_p7 = scmp.lt.s32.totalorder %s1163_s18, 2 }
  0x43   : > { %s1333_s20 = scalar_select %p30_p6, %s1159_s17, %s32_s26  }
  0x44   : > { %p1327_p5 = por %p1528_p3, %p39_p13  ;;  %p41_p9 = por %p40_p10, %p39_p13 }
  0x45   : > { %s187_s24 = sand.u32 1, %s1159_s17   ;;  %s831_s28 = sshll.u32 %s1163_s18, 8 }
  0x46   : > { %s1529_s14 = scalar_select %p1327_p5, 1, 0 }
  0x47   : > { %s807_s27 = sshll.u32 %s187_s24, 4  ;;  %s1340_s5 = scalar_lea.hbm %s1516_s0, %s831_s28 }
  0x48   : > { %s191_s6 = scalar_lea.vmem [#allocation2], %s807_s27  ;;  %p1344_p11 = pnand %p925_p7, %p41_p9 }
  0x49   : > { %s198_s25 = sshll.u32 %s191_s6, 4  ;;  %s1348_s8 = scalar_lea.sflag [#allocation3], %s187_s24  ;;  %s1342_s25 = int_to_ptr.vmem [resolvable:$true] %s198_s25 }
  0x4a   : > { %s1031_s9 = scalar_lea.hbm %s1340_s5, 256  ;;  %p1033_p0 = pneg %p1344_p11 }
  0x4b   : > { %p1032_p12 = scmp.ne.s32.totalorder %s1340_s5, %s1031_s9  ;;  %s1036_s27 = scalar_lea.hbm %s1516_s0, 512 }
  0x4c   : > { %p1037_p13 = scmp.lt.u32.totalorder %s1340_s5, %s1516_s0  ;;  %p1038_p6 = scmp.lt.u32.totalorder %s1036_s27, %s1031_s9 }
  0x4d   : > { %p1034_p1 = pnand %p1033_p0, %p1032_p12  ;;  %p1040_p3 = scmp.lt.u32.totalorder %s1031_s9, %s1340_s5 }
  0x4e   : > { %p1039_p10 = por %p1038_p6, %p1037_p13 }
  0x4f   : > { %p1035_p2 = pneg %p1034_p1 }
  0x50   : > { %p1041_p7 = por %p1040_p3, %p1039_p10 }
  0x52   : > { %p1042_p9 = pnand %p1041_p7, %p1035_p2 }
  0x54   : > { %1045 = shalt.err (!%p1042_p9)
}
  0x55   : > { %s1046_s24 = scalar_lea.vmem %s1342_s25, 256  ;;  %s1169_s30 = smov [#allocation2]  }
  0x56   : > { %p1047_p12 = scmp.ne.s32.totalorder %s1342_s25, %s1046_s24  ;;  %s1051_s6 = sshll.u32 %s1169_s30, 4  ;;  %s1052_s6 = int_to_ptr.vmem [resolvable:$false] %s1051_s6 }
  0x57   : > { %s1053_s26 = scalar_lea.vmem %s1052_s6, 512  ;;  %p1054_p4 = scmp.lt.s32.totalorder %s1342_s25, %s1052_s6 }
  0x58   : > { %p1049_p1 = pnand %p1047_p12, %p1033_p0  ;;  %p1055_p13 = scmp.lt.s32.totalorder %s1053_s26, %s1046_s24 }
  0x5a   : > { %p1050_p5 = pneg %p1049_p1  ;;  %p1056_p6 = por %p1055_p13, %p1054_p4 }
  0x5c   : > { %p1057_p10 = pnand %p1056_p6, %p1050_p5 }
  0x5e   : > { %1060 = shalt.err (!%p1057_p10)
}
  0x5f   : > { %915 = dma.hbm_to_vmem [thread:$0]  (!%p1344_p11), %s1340_s5, 256, %s1342_s25, %s1348_s8, %s1167_s11, %s1167_s11, %s1168_s12  }
  0x60   : > { %210 = sbr.rel (%p1243_p8) target bundleno = 1203 (0x4b3), region = 32  ;;  %s1382_s9 = sand.u32 (!%p1243_p8), 1, %s1155_s16  }
  0x61   : > { %s1385_s13 = sshll.u32 (!%p1243_p8), %s1382_s9, 4  ;;  %s213_s7 = scalar_lea.sflag (!%p1243_p8), [#allocation3], %s1382_s9 }
  0x62   : > { %s216_s27 = scalar_lea.vmem (!%p1243_p8), [#allocation2], %s1385_s13  ;;  %p1531_p4 = scmp.ne.s32.totalorder (!%p1243_p8), %s1524_s21, 0 }
  0x67   : > { %1134 = dma.done.wait (%p1531_p4), %s213_s7, 256  }
  0x68   : > { %1136 = vsyncadd (%p1531_p4), %s213_s7, 4294967040  ;;  %p1532_p5 = scmp.eq.s32.totalorder %s1224_s19, 0 }
  0x6a   : > { %1138 = dma.done.wait (%p1532_p5), [#allocation6], 528   ;;  %p1533_p8 = pmov %p1532_p5 }
  0x6b   : > { %vm271_vm0 = vcmask 261120   ;;  %v260_v0 = vld [vmem:[#allocation5] sm:$0xff]  ;;  %v261_v1 = vld [vmem:[#allocation5 + $0x8] sm:$0xff]  ;;  %v262_v2 = vld [vmem:[#allocation5 + $0x10] sm:$0xff]  ;;  %v1170_v8 = vmov 0.0   ;;  %vm1171_vm1 = vmmov 0  }
  0x6c   : > { %1140 = vsyncadd (%p1533_p8), [#allocation6], 4294966768  ;;  %v883_v3 = vpack.c.bf16 %v261_v1, %v260_v0  ;;  %v263_v4 = vld [vmem:[#allocation5 + $0x18] sm:$0xff]  ;;  %v1397_v5 = vld [vmem:[%s216_s27] sm:$0xff]  ;;  %859 = vmatprep.subr.bf16.mxu1 %v1170_v8  ;;  %861 = vmatprep.mubr.msk.bf16.mxu1 %vm1171_vm1, %v1170_v8  ;;  %s1172_s21 = smov 96   ;;  %vm525_vm2 = vcmask 64512  }
  0x6d   : > { %v887_v6 = vpack.c.bf16 %v263_v4, %v262_v2  ;;  %856 = vmatprep.mubr.msk.f32.mxu0 %vm271_vm0, %v1397_v5  ;;  %v1401_v7 = vld [vmem:[%s216_s27 + $0x8] sm:$0xff]  ;;  %v816_v9 = vld [vmem:[#allocation7] ss:$0 sm:$0xff]  ;;  %s1173_s23 = smov 64   ;;  %vm547_vm3 = vcmask 1043456   ;;  %s253_s11 = scalar_lea.vmem [#allocation9], %s1385_s13 }
  0x6e   : > { %884 = vmatprep.subr.bf16.mxu0 %v883_v3  ;;  %s832_s12 = sshll.u32 %s1224_s19, 8  ;;  %s678_s5 = sshll.u32 %s253_s11, 4  ;;  %s1428_s5 = int_to_ptr.vmem [resolvable:$true] %s678_s5 }
  0x6f   : > { %886 = vmatpush3.bf16.msra.mxu0 %v883_v3  ;;  %s1426_s28 = scalar_lea.hbm %s1520_s4, %s832_s12  ;;  %s649_s29 = scalar_lea.sflag [#allocation10], %s1382_s9 }
  0x70   : > { %888 = vmatprep.subr.bf16.mxu0 %v887_v6  ;;  %s1061_s24 = scalar_lea.vmem %s1428_s5, 256  ;;  %p1534_p0 = scmp.ne.s32.totalorder %s1529_s14, 0 }
  0x71   : > { %p1062_p11 = scmp.ne.s32.totalorder %s1428_s5, %s1061_s24  ;;  %s1174_s30 = smov [#allocation9]  }
  0x72   : > { %s1065_s6 = sshll.u32 %s1174_s30, 4  ;;  %s1066_s6 = int_to_ptr.vmem [resolvable:$false] %s1065_s6 }
  0x73   : > { %890 = vmatpush3.bf16.msra.mxu0 %v887_v6  ;;  %p1063_p2 = pnand %p1062_p11, %p1534_p0  ;;  %s1067_s26 = scalar_lea.vmem %s1066_s6, 512 }
  0x74   : > { %865 = vmatprep.subr.bf16.mxu0 %v1170_v8  ;;  %p1068_p7 = scmp.lt.s32.totalorder %s1428_s5, %s1066_s6  ;;  %p1069_p9 = scmp.lt.s32.totalorder %s1067_s26, %s1061_s24 }
  0x75   : > { %p1064_p3 = pneg %p1063_p2 }
  0x76   : > { %857 = vmatmul.mubr.msk.f32.vlgmr.msra.gmra.mrb[0].mxu0 %vm271_vm0, %v1401_v7  ;;  %p1070_p12 = por %p1069_p9, %p1068_p7 }
  0x77   : > { %867 = vmatprep.mubr.msk.bf16.mxu0 %vm1171_vm1, %v1170_v8 }
  0x78   : > { %p1071_p1 = pnand %p1070_p12, %p1064_p3 }
 0x149   : > { %v858_v10 = vpop.f32.mrb[0].mxu0 }
 0x14a   : > { %v344_v11 = vpop.f32.mrb[1].mxu0  ;;  %v350_v13 = vadd.f32 %v858_v10, %v816_v9 }
 0x14b   : > { %v345_v12 = vadd.f32 %v816_v9, %v344_v11 }
 0x14c   : > { %v354_v15 = vpack.c.bf16 %v350_v13, %v350_v13 }
 0x14d   : > { %v353_v14 = vpack.c.bf16 %v345_v12, %v345_v12 }
 0x14f   : > { %356 = vrot.lane.b32.xlu0 %v353_v14, %s1172_s21 }
 0x153   : > { %405 = vrot.lane.b32.xlu0 %v354_v15, %s1172_s21 }
 0x1c1   : > { %v357_v16 = vpop.permute.xlu0 %356 }
 0x1c2   : > { %v362_v17 = vsel %vm271_vm0, %v357_v16, 0 }
 0x1c3   : > { %860 = vmatpush3.bf16.xpose.msra.mxu1 %v362_v17 }
 0x1c4   : > { %871 = vmatprep.subr.bf16.mxu1 %v1170_v8 }
 0x1c5   : > { %v406_v18 = vpop.permute.xlu0 %405 }
 0x1c6   : > { %v411_v19 = vsel %vm271_vm0, %v406_v18, 0 }
 0x1c7   : > { %866 = vmatpush3.bf16.xpose.msra.mxu0 %v411_v19 }
 0x1c8   : > { %877 = vmatprep.subr.bf16.mxu0 %v1170_v8 }
 0x1ca   : > { %862 = vmatmul.mubr.msk.bf16.vlgmr.msra.gmra.mrb[0].mxu1 %vm271_vm0, %v353_v14 }
 0x1cb   : > { %873 = vmatprep.mubr.msk.bf16.mxu1 %vm1171_vm1, %v1170_v8 }
 0x1ce   : > { %868 = vmatmul.mubr.msk.bf16.vlgmr.msra.gmra.mrb[4].mxu0 %vm271_vm0, %v354_v15 }
 0x1cf   : > { %879 = vmatprep.mubr.msk.bf16.mxu0 %vm1171_vm1, %v1170_v8 }
 0x29d   : > { %v398_v20 = vpop.f32.mrb[0].mxu1 }
 0x29e   : > { %v863_v21 = vpop.f32.mrb[1].mxu1  ;;  %v453_v28 = vmul.f32 0.17677669, %v398_v20 }
 0x29f   : > { %v401_v22 = vpop.f32.mrb[2].mxu1 }
 0x2a0   : > { %v864_v23 = vpop.f32.mrb[3].mxu1  ;;  %v455_v31 = vmax.f32 %v453_v28, 0.0 }
 0x2a1   : > { %v447_v24 = vpop.f32.mrb[4].mxu0 }
 0x2a2   : > { %v454_v25 = vmul.f32 0.17677669, %v447_v24  ;;  %v869_v26 = vpop.f32.mrb[5].mxu0 }
 0x2a3   : > { %v450_v27 = vpop.f32.mrb[6].mxu0 }
 0x2a4   : > { %v456_v29 = vmax.f32 %v454_v25, 0.0  ;;  %v870_v30 = vpop.f32.mrb[7].mxu0 }
 0x2a6   : > { %489 = vxpose.xlu1.b32.start.end [1/1] (short) (narrow) %v456_v29, 8 }
 0x2aa   : > { %457 = vxpose.xlu1.b32.start.end [1/1] (short) (narrow) %v455_v31, 8 }
 0x326   : > { %v505_v32 = vpop.trf.xlu1 }
 0x327   : > { %v522_v33 = vadd.f32 %v505_v32, %v456_v29 }
 0x329   : > { %v524_v34 = vmul.f32 0.5, %v522_v33 }
 0x32a   : > { %v473_v35 = vpop.trf.xlu1 }
 0x32b   : > { %v521_v36 = vadd.f32 %v473_v35, %v455_v31  ;;  %v529_v37 = vsel %vm525_vm2, %v524_v34, 0.0 }
 0x32c   : > { %530 = vadd.xlane.f32.xlu1 %v529_v37 }
 0x32d   : > { %v523_v38 = vmul.f32 0.5, %v521_v36 }
 0x32f   : > { %v526_v39 = vsel %vm525_vm2, %v523_v38, 0.0 }
 0x330   : > { %527 = vadd.xlane.f32.xlu0 %v526_v39 }
 0x33d   : > { %591 = vrot.lane.b32.xlu1 %v354_v15, %s1173_s23 }
 0x346   : > { %542 = vrot.lane.b32.xlu0 %v353_v14, %s1173_s23 }
 0x3b9   : > { %v531_v40 = vpop.xlane.xlu1 %530 }
 0x3ba   : > { %v533_v41 = vadd.f32 1e-08, %v531_v40 }
 0x3bc   : > { %971 = vrcp.f32 %v533_v41 }
 0x3bd   : > { %v528_v42 = vpop.xlane.xlu0 %527  ;;  %v592_v43 = vpop.permute.xlu1 %591 }
 0x3be   : > { %v532_v44 = vadd.f32 1e-08, %v528_v42  ;;  %v597_v45 = vsel %vm547_vm3, %v592_v43, 0 }
 0x3bf   : > { %878 = vmatpush3.bf16.msra.mxu0 %v597_v45 }
 0x3c0   : > { %973 = vrcp.f32 %v532_v44 }
 0x3c1   : > { %v543_v46 = vpop.permute.xlu0 %542 }
 0x3c2   : > { %v549_v47 = vsel %vm547_vm3, %v543_v46, 0 }
 0x3c3   : > { %872 = vmatpush3.bf16.msra.mxu1 %v549_v47 }
 0x3c6   : > { %v972_v48 = vpop.eup %971 }
 0x3c7   : > { %v539_v49 = vmul.f32 %v972_v48, %v524_v34 }
 0x3c9   : > { %v541_v50 = vpack.c.bf16 %v539_v49, %v539_v49  ;;  %642 = vst.msk [vmem:[%s253_s11 + $0x8] sm:$0xff] %vm525_vm2, %v539_v49 }
 0x3ca   : > { %v974_v51 = vpop.eup %973 }
 0x3cb   : > { %v538_v52 = vmul.f32 %v974_v51, %v523_v38  ;;  %880 = vmatmul.mubr.msk.bf16.vlgmr.msra.gmra.mrb[8].mxu0 %vm525_vm2, %v541_v50 }
 0x3cd   : > { %v540_v53 = vpack.c.bf16 %v538_v52, %v538_v52  ;;  %641 = vst.msk [vmem:[%s253_s11] sm:$0xff] %vm525_vm2, %v538_v52 }
 0x3cf   : > { %874 = vmatmul.mubr.msk.bf16.vlgmr.msra.gmra.mrb[4].mxu1 %vm525_vm2, %v540_v53 }
 0x3d0   : > { %1074 = shalt.err (!%p1071_p1)
}
 0x3d1   : > { %s1075_s7 = scalar_lea.hbm %s1426_s28, 256  ;;  %s1079_s23 = scalar_lea.hbm %s1520_s4, 512 }
 0x3d2   : > { %p1076_p13 = scmp.ne.s32.totalorder %s1426_s28, %s1075_s7  ;;  %p1080_p4 = scmp.lt.u32.totalorder %s1426_s28, %s1520_s4 }
 0x3d3   : > { %p1081_p5 = scmp.lt.u32.totalorder %s1079_s23, %s1075_s7  ;;  %p1083_p11 = scmp.lt.u32.totalorder %s1075_s7, %s1426_s28 }
 0x3d4   : > { %p1077_p6 = pnand %p1076_p13, %p1534_p0 }
 0x3d5   : > { %p1082_p8 = por %p1081_p5, %p1080_p4 }
 0x3d6   : > { %p1078_p10 = pneg %p1077_p6 }
 0x3d7   : > { %p1084_p2 = por %p1083_p11, %p1082_p8 }
 0x3d9   : > { %p1085_p3 = pnand %p1084_p2, %p1078_p10 }
 0x3db   : > { %1088 = shalt.err (!%p1085_p3)
}
 0x3dc   : > { %s1175_s8 = smov 128   ;;  %s1176_s24 = smov 8  }
 0x3dd   : > { %902 = dma.vmem_to_hbm [thread:$0]  (%p1534_p0), %s1428_s5, 256, %s1426_s28, %s649_s29, %s1175_s8, %s1175_s8, %s1176_s24  }
 0x3de   : > { %s246_s30 = scalar_lea.vmem [#allocation8], %s1385_s13  ;;  %s1468_s13 = scalar_lea.hbm %s1519_s3, %s832_s12 }
 0x3df   : > { %s662_s6 = sshll.u32 %s246_s30, 4  ;;  %s644_s29 = scalar_lea.sflag [#allocation4], %s1382_s9  ;;  %s1460_s6 = int_to_ptr.vmem [resolvable:$true] %s662_s6 }
 0x3e0   : > { %s1089_s26 = scalar_lea.vmem %s1460_s6, 256  ;;  %s1177_s7 = smov [#allocation8]  }
 0x3e1   : > { %p1090_p7 = scmp.ne.s32.totalorder %s1460_s6, %s1089_s26  ;;  %s1093_s27 = sshll.u32 %s1177_s7, 4  ;;  %s1094_s27 = int_to_ptr.vmem [resolvable:$false] %s1093_s27 }
 0x3e2   : > { %s1095_s21 = scalar_lea.vmem %s1094_s27, 512  ;;  %p1096_p1 = scmp.lt.s32.totalorder %s1460_s6, %s1094_s27 }
 0x3e3   : > { %p1091_p9 = pnand %p1090_p7, %p1534_p0  ;;  %p1097_p13 = scmp.lt.s32.totalorder %s1095_s21, %s1089_s26 }
 0x3e5   : > { %p1092_p12 = pneg %p1091_p9  ;;  %p1098_p6 = por %p1097_p13, %p1096_p1 }
 0x3e7   : > { %p1099_p10 = pnand %p1098_p6, %p1092_p12 }
 0x49e   : > { %v633_v54 = vpop.f32.mrb[8].mxu0 }
 0x49f   : > { %v634_v55 = vadd.f32 %v633_v54, %v1401_v7  ;;  %v881_v56 = vpop.f32.mrb[9].mxu0 }
 0x4a0   : > { %v636_v57 = vpop.f32.mrb[10].mxu0 }
 0x4a1   : > { %640 = vst.msk [vmem:[%s246_s30 + $0x8] sm:$0xff] %vm271_vm0, %v634_v55  ;;  %v882_v58 = vpop.f32.mrb[11].mxu0 }
 0x4a2   : > { %v585_v59 = vpop.f32.mrb[4].mxu1 }
 0x4a3   : > { %v586_v60 = vadd.f32 %v585_v59, %v1397_v5  ;;  %v875_v61 = vpop.f32.mrb[5].mxu1 }
 0x4a4   : > { %v588_v62 = vpop.f32.mrb[6].mxu1 }
 0x4a5   : > { %639 = vst.msk [vmem:[%s246_s30] sm:$0xff] %vm271_vm0, %v586_v60  ;;  %v876_v63 = vpop.f32.mrb[7].mxu1 }
 0x4a6   : > { %1102 = shalt.err (!%p1099_p10)
}
 0x4a7   : > { %s1103_s19 = scalar_lea.hbm %s1468_s13, 256  ;;  %s1107_s11 = scalar_lea.hbm %s1519_s3, 512 }
 0x4a8   : > { %p1104_p4 = scmp.ne.s32.totalorder %s1468_s13, %s1103_s19  ;;  %p1108_p11 = scmp.lt.u32.totalorder %s1468_s13, %s1519_s3 }
 0x4a9   : > { %p1109_p2 = scmp.lt.u32.totalorder %s1107_s11, %s1103_s19  ;;  %p1111_p7 = scmp.lt.u32.totalorder %s1103_s19, %s1468_s13 }
 0x4aa   : > { %p1105_p5 = pnand %p1104_p4, %p1534_p0 }
 0x4ab   : > { %p1110_p3 = por %p1109_p2, %p1108_p11 }
 0x4ac   : > { %p1106_p8 = pneg %p1105_p5 }
 0x4ad   : > { %p1112_p9 = por %p1111_p7, %p1110_p3 }
 0x4af   : > { %p1113_p12 = pnand %p1112_p9, %p1106_p8 }
 0x4b1   : > { %1116 = shalt.err (!%p1113_p12)
}
 0x4b2   : > { %901 = dma.vmem_to_hbm [thread:$0]  (%p1534_p0), %s1460_s6, 256, %s1468_s13, %s644_s29, %s1175_s8, %s1175_s8, %s1176_s24  }
 0x4b3 PF: > { %s693_s5 = sand.u32 1, %s1151_s15   ;;  %p1535_p1 = scmp.ne.s32.totalorder %s1525_s22, 0 }
 0x4b4   : > { %p1536_p13 = scmp.ge.s32.totalorder %s1163_s18, 2  ;;  %s694_s28 = scalar_lea.sflag [#allocation4], %s693_s5 }
 0x4b6   : > { %p917_p6 = pnand %p1536_p13, %p1535_p1 }
 0x4b8   : > { %1142 = dma.done.wait (!%p917_p6), %s694_s28, 256  }
 0x4b9   : > { %1144 = vsyncadd (!%p917_p6), %s694_s28, 4294967040  ;;  %s703_s14 = scalar_lea.sflag [#allocation10], %s693_s5 }
 0x4ba   : > { %1146 = dma.done.wait (!%p917_p6), %s703_s14, 256  }
 0x4bb   : > { %1148 = vsyncadd (!%p917_p6), %s703_s14, 4294967040  ;;  %p22_p0 = scmp.ge.s32.totalorder %s1317_s10, 4   ;;  %s1537_s15 = smov %s1155_s16 }
 0x4bc   : > { %s1538_s16 = smov %s1159_s17  ;;  %s1539_s17 = smov %s1333_s20 }
 0x4bd   : > { %s1540_s18 = smov %s1317_s10  ;;  %24 = sbr.rel (!%p22_p0) target bundleno = 8 (0x8), region = 102 }
 0x4c4   :  { %708 = vsyncpa [#allocation3], 1 }
 0x4c5   :  { %710 = vsyncpa [#allocation3 + $0x1], 1 }
 0x4c6   :  { %711 = vsyncpa [#allocation6], 1 }
 0x4c7   :  { %712 = vsyncpa [#allocation4], 1 }
 0x4c8   :  { %714 = vsyncpa [#allocation4 + $0x1], 1 }
 0x4c9   :  { %715 = vsyncpa [#allocation10], 1 }
 0x4ca   :  { %717 = vsyncpa [#allocation10 + $0x1], 1 }

// kernel: tpu_custom_call.1
= control target key start
LH: loop header
LB: loop body
LE: loop exit
PB: predicated region body
PF: predicated region fallthrough
CT: control target
= control target key end

     0   :  { %10 = vsyncpa [#allocation3], 0  ;;  %s1516_s0 = inlined_call_operand.hbm [shape: f32[4,8,32], index: 0, kind: input, shape index: {}]   ;;  %s1517_s1 = inlined_call_operand.hbm [shape: f32[32,96], index: 1, kind: input, shape index: {}]   ;;  %s1518_s2 = inlined_call_operand.hbm [shape: f32[1,96], index: 2, kind: input, shape index: {}]   ;;  %s1519_s3 = inlined_call_operand.hbm [shape: f32[4,8,32], index: 3, kind: output, shape index: {0}]   ;;  %s1520_s4 = inlined_call_operand.hbm [shape: f32[4,8,8], index: 4, kind: output, shape index: {1}]  }
   0x1   :  { %12 = vsyncpa [#allocation3 + $0x1], 0 }
   0x2   :  { %13 = vsyncpa [#allocation6], 0 }
   0x3   :  { %14 = vsyncpa [#allocation4], 0 }
   0x4   :  { %16 = vsyncpa [#allocation4 + $0x1], 0 }
   0x5   :  { %17 = vsyncpa [#allocation10], 0 }
   0x6   :  { %19 = vsyncpa [#allocation10 + $0x1], 0  ;;  %s1203_s15 = smov 0   ;;  %s1205_s16 = smov 0  }
   0x7   :  { %s1207_s17 = smov 0   ;;  %s1209_s18 = smov 0  }
   0x8 LB: > { %s1224_s19 = sadd.s32 4294967295, %s1163_s18   ;;  %s802_s20 = sadd.s32 4294967294, %s1163_s18   ;;  %s1163_s18 = sphi %s1209_s18, %s1540_s18   ;;  %s1159_s17 = sphi %s1207_s17, %s1539_s17   ;;  %s1155_s16 = sphi %s1205_s16, %s1538_s16   ;;  %s1151_s15 = sphi %s1203_s15, %s1537_s15  }
   0x9   : > { %p45_p0 = scmp.ne.s32.totalorder %s1155_s16, %s1151_s15  ;;  %p1521_p1 = scmp.eq.s32.totalorder %s1224_s19, 0 }
   0xa   : > { %p117_p3 = scmp.eq.s32.totalorder %s802_s20, 1  ;;  %p803_p5 = scmp.ge.s32.totalorder %s1163_s18, 1 }
   0xb   : > { %p1233_p4 = por %p1521_p1, %p45_p0  ;;  %p150_p7 = scmp.lt.s32.totalorder %s1163_s18, 3 }
   0xc   : > { %p1238_p6 = por %p117_p3, %p45_p0  ;;  %s1165_s24 = smov [#allocation5]  }
   0xd   : > { %s1524_s21 = scalar_select %p1233_p4, 1, 0 }
   0xe   : > { %s1525_s22 = scalar_select %p1238_p6, 1, 0 }
   0xf   : > { %p1243_p8 = pnand %p803_p5, %p150_p7  ;;  %s162_s25 = sshll.u32 %s1165_s24, 4  ;;  %s1247_s25 = int_to_ptr.vmem [resolvable:$true] %s162_s25 }
  0x10   : > { %s1166_s27 = smov [#allocation7]   ;;  %s975_s5 = scalar_lea.hbm %s1517_s1, 512 }
  0x11   : > { %p905_p9 = pneg %p1243_p8  ;;  %s176_s28 = sshll.u32 %s1166_s27, 4  ;;  %s1258_s28 = int_to_ptr.vmem [resolvable:$true] %s176_s28 }
  0x12   : > { %p976_p12 = scmp.ne.s32.totalorder %s1517_s1, %s975_s5  ;;  %p982_p5 = scmp.lt.u32.totalorder %s975_s5, %s1517_s1 }
  0x13   : > { %p1254_p11 = pnand %p905_p9, %p1521_p1 }
  0x15   : > { %p977_p13 = pneg %p1254_p11 }
  0x17   : > { %p978_p0 = pnand %p977_p13, %p976_p12 }
  0x19   : > { %p979_p3 = pneg %p978_p0 }
  0x1b   : > { %p984_p7 = pnand %p982_p5, %p979_p3 }
  0x1d   : > { %987 = shalt.err (!%p984_p7)
}
  0x1e   : > { %s988_s10 = scalar_lea.vmem %s1247_s25, 512  ;;  %p996_p2 = scmp.lt.s32.totalorder %s1247_s25, %s1247_s25 }
  0x1f   : > { %p989_p9 = scmp.ne.s32.totalorder %s1247_s25, %s988_s10  ;;  %p997_p12 = scmp.lt.s32.totalorder %s988_s10, %s988_s10 }
  0x21   : > { %p991_p10 = pnand %p989_p9, %p977_p13  ;;  %p998_p0 = por %p997_p12, %p996_p2 }
  0x23   : > { %p992_p1 = pneg %p991_p10 }
  0x25   : > { %p999_p6 = pnand %p998_p0, %p992_p1 }
  0x27   : > { %1002 = shalt.err (!%p999_p6)
}
  0x28   : > { %s1167_s11 = smov 128   ;;  %s1168_s12 = smov 8  }
  0x29   : > { %908 = dma.hbm_to_vmem [thread:$0]  (!%p1254_p11), %s1517_s1, 512, %s1247_s25, [#allocation6], %s1167_s11, %s1167_s11, %s1168_s12  }
  0x2a   : > { %s1003_s27 = scalar_lea.hbm %s1518_s2, 16 }
  0x2b   : > { %p1004_p1 = scmp.ne.s32.totalorder %s1518_s2, %s1003_s27  ;;  %p1010_p10 = scmp.lt.u32.totalorder %s1003_s27, %s1518_s2 }
  0x2d   : > { %p1006_p2 = pnand %p1004_p1, %p977_p13 }
  0x2f   : > { %p1007_p6 = pneg %p1006_p2 }
  0x31   : > { %p1012_p3 = pnand %p1010_p10, %p1007_p6 }
  0x33   : > { %1015 = shalt.err (!%p1012_p3)
}
  0x34   : > { %s1016_s25 = scalar_lea.vmem %s1258_s28, 16  ;;  %s1023_s7 = scalar_lea.vmem %s1258_s28, 32 }
  0x35   : > { %p1017_p5 = scmp.ne.s32.totalorder %s1258_s28, %s1016_s25  ;;  %p1024_p12 = scmp.lt.s32.totalorder %s1258_s28, %s1258_s28 }
  0x36   : > { %p1025_p0 = scmp.lt.s32.totalorder %s1023_s7, %s1016_s25 }
  0x37   : > { %p1019_p7 = pnand %p1017_p5, %p977_p13 }
  0x38   : > { %p1026_p1 = por %p1025_p0, %p1024_p12 }
  0x39   : > { %p1020_p9 = pneg %p1019_p7 }
  0x3b   : > { %p1027_p2 = pnand %p1026_p1, %p1020_p9 }
  0x3d   : > { %1030 = shalt.err (!%p1027_p2)
}
  0x3e   : > { %911 = dma.hbm_to_vmem [thread:$0]  (!%p1254_p11), %s1518_s2, 16, %s1258_s28, [#allocation6]  }
  0x3f   : > { %s1317_s10 = sadd.s32 1, %s1163_s18   ;;  %s32_s26 = sadd.s32 1, %s1159_s17 }
  0x40   : > { %s29_s13 = ssub.s32 %s1163_s18, %s1317_s10  ;;  %p39_p13 = scmp.ne.s32.totalorder %s1159_s17, %s1155_s16 }
  0x41   : > { %p30_p6 = scmp.eq.s32.totalorder %s29_s13, 0  ;;  %p40_p10 = scmp.eq.s32.totalorder %s1163_s18, 0 }
  0x42   : > { %p1528_p3 = scmp.eq.s32.totalorder %s1224_s19, 1  ;;  %p925_p7 = scmp.lt.s32.totalorder %s1163_s18, 2 }
  0x43   : > { %s1333_s20 = scalar_select %p30_p6, %s1159_s17, %s32_s26  }
  0x44   : > { %p1327_p5 = por %p1528_p3, %p39_p13  ;;  %p41_p9 = por %p40_p10, %p39_p13 }
  0x45   : > { %s187_s24 = sand.u32 1, %s1159_s17   ;;  %s831_s28 = sshll.u32 %s1163_s18, 8 }
  0x46   : > { %s1529_s14 = scalar_select %p1327_p5, 1, 0 }
  0x47   : > { %s807_s27 = sshll.u32 %s187_s24, 4  ;;  %s1340_s5 = scalar_lea.hbm %s1516_s0, %s831_s28 }
  0x48   : > { %s191_s6 = scalar_lea.vmem [#allocation2], %s807_s27  ;;  %p1344_p11 = pnand %p925_p7, %p41_p9 }
  0x49   : > { %s198_s25 = sshll.u32 %s191_s6, 4  ;;  %s1348_s8 = scalar_lea.sflag [#allocation3], %s187_s24  ;;  %s1342_s25 = int_to_ptr.vmem [resolvable:$true] %s198_s25 }
  0x4a   : > { %s1031_s9 = scalar_lea.hbm %s1340_s5, 256  ;;  %p1033_p0 = pneg %p1344_p11 }
  0x4b   : > { %p1032_p12 = scmp.ne.s32.totalorder %s1340_s5, %s1031_s9  ;;  %s1036_s27 = scalar_lea.hbm %s1516_s0, 512 }
  0x4c   : > { %p1037_p13 = scmp.lt.u32.totalorder %s1340_s5, %s1516_s0  ;;  %p1038_p6 = scmp.lt.u32.totalorder %s1036_s27, %s1031_s9 }
  0x4d   : > { %p1034_p1 = pnand %p1033_p0, %p1032_p12  ;;  %p1040_p3 = scmp.lt.u32.totalorder %s1031_s9, %s1340_s5 }
  0x4e   : > { %p1039_p10 = por %p1038_p6, %p1037_p13 }
  0x4f   : > { %p1035_p2 = pneg %p1034_p1 }
  0x50   : > { %p1041_p7 = por %p1040_p3, %p1039_p10 }
  0x52   : > { %p1042_p9 = pnand %p1041_p7, %p1035_p2 }
  0x54   : > { %1045 = shalt.err (!%p1042_p9)
}
  0x55   : > { %s1046_s24 = scalar_lea.vmem %s1342_s25, 256  ;;  %s1169_s30 = smov [#allocation2]  }
  0x56   : > { %p1047_p12 = scmp.ne.s32.totalorder %s1342_s25, %s1046_s24  ;;  %s1051_s6 = sshll.u32 %s1169_s30, 4  ;;  %s1052_s6 = int_to_ptr.vmem [resolvable:$false] %s1051_s6 }
  0x57   : > { %s1053_s26 = scalar_lea.vmem %s1052_s6, 512  ;;  %p1054_p4 = scmp.lt.s32.totalorder %s1342_s25, %s1052_s6 }
  0x58   : > { %p1049_p1 = pnand %p1047_p12, %p1033_p0  ;;  %p1055_p13 = scmp.lt.s32.totalorder %s1053_s26, %s1046_s24 }
  0x5a   : > { %p1050_p5 = pneg %p1049_p1  ;;  %p1056_p6 = por %p1055_p13, %p1054_p4 }
  0x5c   : > { %p1057_p10 = pnand %p1056_p6, %p1050_p5 }
  0x5e   : > { %1060 = shalt.err (!%p1057_p10)
}
  0x5f   : > { %915 = dma.hbm_to_vmem [thread:$0]  (!%p1344_p11), %s1340_s5, 256, %s1342_s25, %s1348_s8, %s1167_s11, %s1167_s11, %s1168_s12  }
  0x60   : > { %210 = sbr.rel (%p1243_p8) target bundleno = 1203 (0x4b3), region = 32  ;;  %s1382_s9 = sand.u32 (!%p1243_p8), 1, %s1155_s16  }
  0x61   : > { %s1385_s13 = sshll.u32 (!%p1243_p8), %s1382_s9, 4  ;;  %s213_s7 = scalar_lea.sflag (!%p1243_p8), [#allocation3], %s1382_s9 }
  0x62   : > { %s216_s27 = scalar_lea.vmem (!%p1243_p8), [#allocation2], %s1385_s13  ;;  %p1531_p4 = scmp.ne.s32.totalorder (!%p1243_p8), %s1524_s21, 0 }
  0x67   : > { %1134 = dma.done.wait (%p1531_p4), %s213_s7, 256  }
  0x68   : > { %1136 = vsyncadd (%p1531_p4), %s213_s7, 4294967040  ;;  %p1532_p5 = scmp.eq.s32.totalorder %s1224_s19, 0 }
  0x6a   : > { %1138 = dma.done.wait (%p1532_p5), [#allocation6], 528   ;;  %p1533_p8 = pmov %p1532_p5 }
  0x6b   : > { %vm271_vm0 = vcmask 261120   ;;  %v260_v0 = vld [vmem:[#allocation5] sm:$0xff]  ;;  %v261_v1 = vld [vmem:[#allocation5 + $0x8] sm:$0xff]  ;;  %v262_v2 = vld [vmem:[#allocation5 + $0x10] sm:$0xff]  ;;  %v1170_v8 = vmov 0.0   ;;  %vm1171_vm1 = vmmov 0  }
  0x6c   : > { %1140 = vsyncadd (%p1533_p8), [#allocation6], 4294966768  ;;  %v883_v3 = vpack.c.bf16 %v261_v1, %v260_v0  ;;  %v263_v4 = vld [vmem:[#allocation5 + $0x18] sm:$0xff]  ;;  %v1397_v5 = vld [vmem:[%s216_s27] sm:$0xff]  ;;  %859 = vmatprep.subr.bf16.mxu1 %v1170_v8  ;;  %861 = vmatprep.mubr.msk.bf16.mxu1 %vm1171_vm1, %v1170_v8  ;;  %s1172_s21 = smov 96   ;;  %vm525_vm2 = vcmask 64512  }
  0x6d   : > { %v887_v6 = vpack.c.bf16 %v263_v4, %v262_v2  ;;  %856 = vmatprep.mubr.msk.f32.mxu0 %vm271_vm0, %v1397_v5  ;;  %v1401_v7 = vld [vmem:[%s216_s27 + $0x8] sm:$0xff]  ;;  %v816_v9 = vld [vmem:[#allocation7] ss:$0 sm:$0xff]  ;;  %s1173_s23 = smov 64   ;;  %vm547_vm3 = vcmask 1043456   ;;  %s253_s11 = scalar_lea.vmem [#allocation9], %s1385_s13 }
  0x6e   : > { %884 = vmatprep.subr.bf16.mxu0 %v883_v3  ;;  %s832_s12 = sshll.u32 %s1224_s19, 8  ;;  %s678_s5 = sshll.u32 %s253_s11, 4  ;;  %s1428_s5 = int_to_ptr.vmem [resolvable:$true] %s678_s5 }
  0x6f   : > { %886 = vmatpush3.bf16.msra.mxu0 %v883_v3  ;;  %s1426_s28 = scalar_lea.hbm %s1520_s4, %s832_s12  ;;  %s649_s29 = scalar_lea.sflag [#allocation10], %s1382_s9 }
  0x70   : > { %888 = vmatprep.subr.bf16.mxu0 %v887_v6  ;;  %s1061_s24 = scalar_lea.vmem %s1428_s5, 256  ;;  %p1534_p0 = scmp.ne.s32.totalorder %s1529_s14, 0 }
  0x71   : > { %p1062_p11 = scmp.ne.s32.totalorder %s1428_s5, %s1061_s24  ;;  %s1174_s30 = smov [#allocation9]  }
  0x72   : > { %s1065_s6 = sshll.u32 %s1174_s30, 4  ;;  %s1066_s6 = int_to_ptr.vmem [resolvable:$false] %s1065_s6 }
  0x73   : > { %890 = vmatpush3.bf16.msra.mxu0 %v887_v6  ;;  %p1063_p2 = pnand %p1062_p11, %p1534_p0  ;;  %s1067_s26 = scalar_lea.vmem %s1066_s6, 512 }
  0x74   : > { %865 = vmatprep.subr.bf16.mxu0 %v1170_v8  ;;  %p1068_p7 = scmp.lt.s32.totalorder %s1428_s5, %s1066_s6  ;;  %p1069_p9 = scmp.lt.s32.totalorder %s1067_s26, %s1061_s24 }
  0x75   : > { %p1064_p3 = pneg %p1063_p2 }
  0x76   : > { %857 = vmatmul.mubr.msk.f32.vlgmr.msra.gmra.mrb[0].mxu0 %vm271_vm0, %v1401_v7  ;;  %p1070_p12 = por %p1069_p9, %p1068_p7 }
  0x77   : > { %867 = vmatprep.mubr.msk.bf16.mxu0 %vm1171_vm1, %v1170_v8 }
  0x78   : > { %p1071_p1 = pnand %p1070_p12, %p1064_p3 }
 0x149   : > { %v858_v10 = vpop.f32.mrb[0].mxu0 }
 0x14a   : > { %v344_v11 = vpop.f32.mrb[1].mxu0  ;;  %v350_v13 = vadd.f32 %v858_v10, %v816_v9 }
 0x14b   : > { %v345_v12 = vadd.f32 %v816_v9, %v344_v11 }
 0x14c   : > { %v354_v15 = vpack.c.bf16 %v350_v13, %v350_v13 }
 0x14d   : > { %v353_v14 = vpack.c.bf16 %v345_v12, %v345_v12 }
 0x14f   : > { %356 = vrot.lane.b32.xlu0 %v353_v14, %s1172_s21 }
 0x153   : > { %405 = vrot.lane.b32.xlu0 %v354_v15, %s1172_s21 }
 0x1c1   : > { %v357_v16 = vpop.permute.xlu0 %356 }
 0x1c2   : > { %v362_v17 = vsel %vm271_vm0, %v357_v16, 0 }
 0x1c3   : > { %860 = vmatpush3.bf16.xpose.msra.mxu1 %v362_v17 }
 0x1c4   : > { %871 = vmatprep.subr.bf16.mxu1 %v1170_v8 }
 0x1c5   : > { %v406_v18 = vpop.permute.xlu0 %405 }
 0x1c6   : > { %v411_v19 = vsel %vm271_vm0, %v406_v18, 0 }
 0x1c7   : > { %866 = vmatpush3.bf16.xpose.msra.mxu0 %v411_v19 }
 0x1c8   : > { %877 = vmatprep.subr.bf16.mxu0 %v1170_v8 }
 0x1ca   : > { %862 = vmatmul.mubr.msk.bf16.vlgmr.msra.gmra.mrb[0].mxu1 %vm271_vm0, %v353_v14 }
 0x1cb   : > { %873 = vmatprep.mubr.msk.bf16.mxu1 %vm1171_vm1, %v1170_v8 }
 0x1ce   : > { %868 = vmatmul.mubr.msk.bf16.vlgmr.msra.gmra.mrb[4].mxu0 %vm271_vm0, %v354_v15 }
 0x1cf   : > { %879 = vmatprep.mubr.msk.bf16.mxu0 %vm1171_vm1, %v1170_v8 }
 0x29d   : > { %v398_v20 = vpop.f32.mrb[0].mxu1 }
 0x29e   : > { %v863_v21 = vpop.f32.mrb[1].mxu1  ;;  %v453_v28 = vmul.f32 0.17677669, %v398_v20 }
 0x29f   : > { %v401_v22 = vpop.f32.mrb[2].mxu1 }
 0x2a0   : > { %v864_v23 = vpop.f32.mrb[3].mxu1  ;;  %v455_v31 = vmax.f32 %v453_v28, 0.0 }
 0x2a1   : > { %v447_v24 = vpop.f32.mrb[4].mxu0 }
 0x2a2   : > { %v454_v25 = vmul.f32 0.17677669, %v447_v24  ;;  %v869_v26 = vpop.f32.mrb[5].mxu0 }
 0x2a3   : > { %v450_v27 = vpop.f32.mrb[6].mxu0 }
 0x2a4   : > { %v456_v29 = vmax.f32 %v454_v25, 0.0  ;;  %v870_v30 = vpop.f32.mrb[7].mxu0 }
 0x2a6   : > { %489 = vxpose.xlu1.b32.start.end [1/1] (short) (narrow) %v456_v29, 8 }
 0x2aa   : > { %457 = vxpose.xlu1.b32.start.end [1/1] (short) (narrow) %v455_v31, 8 }
 0x326   : > { %v505_v32 = vpop.trf.xlu1 }
 0x327   : > { %v522_v33 = vadd.f32 %v505_v32, %v456_v29 }
 0x329   : > { %v524_v34 = vmul.f32 0.5, %v522_v33 }
 0x32a   : > { %v473_v35 = vpop.trf.xlu1 }
 0x32b   : > { %v521_v36 = vadd.f32 %v473_v35, %v455_v31  ;;  %v529_v37 = vsel %vm525_vm2, %v524_v34, 0.0 }
 0x32c   : > { %530 = vadd.xlane.f32.xlu1 %v529_v37 }
 0x32d   : > { %v523_v38 = vmul.f32 0.5, %v521_v36 }
 0x32f   : > { %v526_v39 = vsel %vm525_vm2, %v523_v38, 0.0 }
 0x330   : > { %527 = vadd.xlane.f32.xlu0 %v526_v39 }
 0x33d   : > { %591 = vrot.lane.b32.xlu1 %v354_v15, %s1173_s23 }
 0x346   : > { %542 = vrot.lane.b32.xlu0 %v353_v14, %s1173_s23 }
 0x3b9   : > { %v531_v40 = vpop.xlane.xlu1 %530 }
 0x3ba   : > { %v533_v41 = vadd.f32 1e-08, %v531_v40 }
 0x3bc   : > { %971 = vrcp.f32 %v533_v41 }
 0x3bd   : > { %v528_v42 = vpop.xlane.xlu0 %527  ;;  %v592_v43 = vpop.permute.xlu1 %591 }
 0x3be   : > { %v532_v44 = vadd.f32 1e-08, %v528_v42  ;;  %v597_v45 = vsel %vm547_vm3, %v592_v43, 0 }
 0x3bf   : > { %878 = vmatpush3.bf16.msra.mxu0 %v597_v45 }
 0x3c0   : > { %973 = vrcp.f32 %v532_v44 }
 0x3c1   : > { %v543_v46 = vpop.permute.xlu0 %542 }
 0x3c2   : > { %v549_v47 = vsel %vm547_vm3, %v543_v46, 0 }
 0x3c3   : > { %872 = vmatpush3.bf16.msra.mxu1 %v549_v47 }
 0x3c6   : > { %v972_v48 = vpop.eup %971 }
 0x3c7   : > { %v539_v49 = vmul.f32 %v972_v48, %v524_v34 }
 0x3c9   : > { %v541_v50 = vpack.c.bf16 %v539_v49, %v539_v49  ;;  %642 = vst.msk [vmem:[%s253_s11 + $0x8] sm:$0xff] %vm525_vm2, %v539_v49 }
 0x3ca   : > { %v974_v51 = vpop.eup %973 }
 0x3cb   : > { %v538_v52 = vmul.f32 %v974_v51, %v523_v38  ;;  %880 = vmatmul.mubr.msk.bf16.vlgmr.msra.gmra.mrb[8].mxu0 %vm525_vm2, %v541_v50 }
 0x3cd   : > { %v540_v53 = vpack.c.bf16 %v538_v52, %v538_v52  ;;  %641 = vst.msk [vmem:[%s253_s11] sm:$0xff] %vm525_vm2, %v538_v52 }
 0x3cf   : > { %874 = vmatmul.mubr.msk.bf16.vlgmr.msra.gmra.mrb[4].mxu1 %vm525_vm2, %v540_v53 }
 0x3d0   : > { %1074 = shalt.err (!%p1071_p1)
}
 0x3d1   : > { %s1075_s7 = scalar_lea.hbm %s1426_s28, 256  ;;  %s1079_s23 = scalar_lea.hbm %s1520_s4, 512 }
 0x3d2   : > { %p1076_p13 = scmp.ne.s32.totalorder %s1426_s28, %s1075_s7  ;;  %p1080_p4 = scmp.lt.u32.totalorder %s1426_s28, %s1520_s4 }
 0x3d3   : > { %p1081_p5 = scmp.lt.u32.totalorder %s1079_s23, %s1075_s7  ;;  %p1083_p11 = scmp.lt.u32.totalorder %s1075_s7, %s1426_s28 }
 0x3d4   : > { %p1077_p6 = pnand %p1076_p13, %p1534_p0 }
 0x3d5   : > { %p1082_p8 = por %p1081_p5, %p1080_p4 }
 0x3d6   : > { %p1078_p10 = pneg %p1077_p6 }
 0x3d7   : > { %p1084_p2 = por %p1083_p11, %p1082_p8 }
 0x3d9   : > { %p1085_p3 = pnand %p1084_p2, %p1078_p10 }
 0x3db   : > { %1088 = shalt.err (!%p1085_p3)
}
 0x3dc   : > { %s1175_s8 = smov 128   ;;  %s1176_s24 = smov 8  }
 0x3dd   : > { %902 = dma.vmem_to_hbm [thread:$0]  (%p1534_p0), %s1428_s5, 256, %s1426_s28, %s649_s29, %s1175_s8, %s1175_s8, %s1176_s24  }
 0x3de   : > { %s246_s30 = scalar_lea.vmem [#allocation8], %s1385_s13  ;;  %s1468_s13 = scalar_lea.hbm %s1519_s3, %s832_s12 }
 0x3df   : > { %s662_s6 = sshll.u32 %s246_s30, 4  ;;  %s644_s29 = scalar_lea.sflag [#allocation4], %s1382_s9  ;;  %s1460_s6 = int_to_ptr.vmem [resolvable:$true] %s662_s6 }
 0x3e0   : > { %s1089_s26 = scalar_lea.vmem %s1460_s6, 256  ;;  %s1177_s7 = smov [#allocation8]  }
 0x3e1   : > { %p1090_p7 = scmp.ne.s32.totalorder %s1460_s6, %s1089_s26  ;;  %s1093_s27 = sshll.u32 %s1177_s7, 4  ;;  %s1094_s27 = int_to_ptr.vmem [resolvable:$false] %s1093_s27 }
 0x3e2   : > { %s1095_s21 = scalar_lea.vmem %s1094_s27, 512  ;;  %p1096_p1 = scmp.lt.s32.totalorder %s1460_s6, %s1094_s27 }
 0x3e3   : > { %p1091_p9 = pnand %p1090_p7, %p1534_p0  ;;  %p1097_p13 = scmp.lt.s32.totalorder %s1095_s21, %s1089_s26 }
 0x3e5   : > { %p1092_p12 = pneg %p1091_p9  ;;  %p1098_p6 = por %p1097_p13, %p1096_p1 }
 0x3e7   : > { %p1099_p10 = pnand %p1098_p6, %p1092_p12 }
 0x49e   : > { %v633_v54 = vpop.f32.mrb[8].mxu0 }
 0x49f   : > { %v634_v55 = vadd.f32 %v633_v54, %v1401_v7  ;;  %v881_v56 = vpop.f32.mrb[9].mxu0 }
 0x4a0   : > { %v636_v57 = vpop.f32.mrb[10].mxu0 }
 0x4a1   : > { %640 = vst.msk [vmem:[%s246_s30 + $0x8] sm:$0xff] %vm271_vm0, %v634_v55  ;;  %v882_v58 = vpop.f32.mrb[11].mxu0 }
 0x4a2   : > { %v585_v59 = vpop.f32.mrb[4].mxu1 }
 0x4a3   : > { %v586_v60 = vadd.f32 %v585_v59, %v1397_v5  ;;  %v875_v61 = vpop.f32.mrb[5].mxu1 }
 0x4a4   : > { %v588_v62 = vpop.f32.mrb[6].mxu1 }
 0x4a5   : > { %639 = vst.msk [vmem:[%s246_s30] sm:$0xff] %vm271_vm0, %v586_v60  ;;  %v876_v63 = vpop.f32.mrb[7].mxu1 }
 0x4a6   : > { %1102 = shalt.err (!%p1099_p10)
}
 0x4a7   : > { %s1103_s19 = scalar_lea.hbm %s1468_s13, 256  ;;  %s1107_s11 = scalar_lea.hbm %s1519_s3, 512 }
 0x4a8   : > { %p1104_p4 = scmp.ne.s32.totalorder %s1468_s13, %s1103_s19  ;;  %p1108_p11 = scmp.lt.u32.totalorder %s1468_s13, %s1519_s3 }
 0x4a9   : > { %p1109_p2 = scmp.lt.u32.totalorder %s1107_s11, %s1103_s19  ;;  %p1111_p7 = scmp.lt.u32.totalorder %s1103_s19, %s1468_s13 }
 0x4aa   : > { %p1105_p5 = pnand %p1104_p4, %p1534_p0 }
 0x4ab   : > { %p1110_p3 = por %p1109_p2, %p1108_p11 }
 0x4ac   : > { %p1106_p8 = pneg %p1105_p5 }
 0x4ad   : > { %p1112_p9 = por %p1111_p7, %p1110_p3 }
 0x4af   : > { %p1113_p12 = pnand %p1112_p9, %p1106_p8 }
 0x4b1   : > { %1116 = shalt.err (!%p1113_p12)
}
 0x4b2   : > { %901 = dma.vmem_to_hbm [thread:$0]  (%p1534_p0), %s1460_s6, 256, %s1468_s13, %s644_s29, %s1175_s8, %s1175_s8, %s1176_s24  }
 0x4b3 PF: > { %s693_s5 = sand.u32 1, %s1151_s15   ;;  %p1535_p1 = scmp.ne.s32.totalorder %s1525_s22, 0 }
 0x4b4   : > { %p1536_p13 = scmp.ge.s32.totalorder %s1163_s18, 2  ;;  %s694_s28 = scalar_lea.sflag [#allocation4], %s693_s5 }
 0x4b6   : > { %p917_p6 = pnand %p1536_p13, %p1535_p1 }
 0x4b8   : > { %1142 = dma.done.wait (!%p917_p6), %s694_s28, 256  }
 0x4b9   : > { %1144 = vsyncadd (!%p917_p6), %s694_s28, 4294967040  ;;  %s703_s14 = scalar_lea.sflag [#allocation10], %s693_s5 }
 0x4ba   : > { %1146 = dma.done.wait (!%p917_p6), %s703_s14, 256  }
 0x4bb   : > { %1148 = vsyncadd (!%p917_p6), %s703_s14, 4294967040  ;;  %p22_p0 = scmp.ge.s32.totalorder %s1317_s10, 4   ;;  %s1537_s15 = smov %s1155_s16 }
 0x4bc   : > { %s1538_s16 = smov %s1159_s17  ;;  %s1539_s17 = smov %s1333_s20 }
 0x4bd   : > { %s1540_s18 = smov %s1317_s10  ;;  %24 = sbr.rel (!%p22_p0) target bundleno = 8 (0x8), region = 102 }
 0x4c4   :  { %708 = vsyncpa [#allocation3], 1 }
 0x4c5   :  { %710 = vsyncpa [#allocation3 + $0x1], 1 }
 0x4c6   :  { %711 = vsyncpa [#allocation6], 1 }
 0x4c7   :  { %712 = vsyncpa [#allocation4], 1 }
 0x4c8   :  { %714 = vsyncpa [#allocation4 + $0x1], 1 }
 0x4c9   :  { %715 = vsyncpa [#allocation10], 1 }
 0x4ca   :  { %717 = vsyncpa [#allocation10 + $0x1], 1 }

</bundles_post_ra>
